<compile_context>
chip_gen: v6e
topology: v6e:2x2x1
jax: 0.10.0
libtpu: 0.0.40
codegen_flags: <defaults>
</compile_context>

<pallas_src>
import functools

import jax
import jax.numpy as jnp
from jax.experimental import pallas as pl
from jax.experimental.pallas import tpu as pltpu

# ----------------------------- sizes (small, consistent with the forward) ---
B = 2            # batch
T = 1024         # waveform samples
FL = 128         # frame length (synthetic "patch" size), lane-dense
NF = T // FL     # frames per clip
D = 128          # encoder feature dim
H = 128          # projection hidden dim
E = 128          # output embedding dim


# ----------------------------- fused kernel ---------------------------------
def _clap_fused_kernel(fr_ref, wf_ref, bf_ref, w2_ref, b2_ref, o_ref,
                       *, quantize: bool):
    frames = fr_ref[...]                                       # (B, NF, FL)

    if quantize:
        # int16_to_float32(float32_to_int16(x)) — elementwise, commutes with
        # the (B,T)->(B,NF,FL) framing done in the wrapper.
        x = jnp.clip(frames, -1.0, 1.0)
        # torch: (x*32767).type(torch.int16) truncates toward zero; values lie
        # in [-32767, 32767] so int32 truncation is bit-equivalent.
        frames = (x * 32767.0).astype(jnp.int32).astype(jnp.float32) / 32767.0

    # temporal mean-pool BEFORE the (linear) patch embed: exact by linearity.
    pooled = jnp.mean(frames, axis=1)                          # (B, FL)

    # projection (patch-embed @ wp and MLP first layer pre-folded into wf/bf):
    #   h = relu(mean(f) @ (wp @ w1) + (bp @ w1 + b1))
    h = jnp.dot(pooled, wf_ref[...],
                preferred_element_type=jnp.float32) + bf_ref[...]
    h = jnp.maximum(h, 0.0)
    y = jnp.dot(h, w2_ref[...],
                preferred_element_type=jnp.float32) + b2_ref[...]

    # F.normalize(..., dim=-1): y / max(||y||_2, eps)
    norm = jnp.sqrt(jnp.sum(y * y, axis=-1, keepdims=True))
    o_ref[...] = y / jnp.maximum(norm, 1e-12)


def clap_embed(frames, fused, *, quantize: bool):
    """frames: (B, NF, FL) float32, fused: dict of folded params -> (B, E)."""
    full = lambda shape: pl.BlockSpec(shape, lambda: (0,) * len(shape))
    wf, bf, w2, b2 = fused["w_fused"], fused["b_fused"], fused["w2"], fused["b2"]
    kernel = functools.partial(_clap_fused_kernel, quantize=quantize)
    return pl.pallas_call(
        kernel,
        out_shape=jax.ShapeDtypeStruct((frames.shape[0], E), jnp.float32),
        in_specs=[
            full(frames.shape),
            full(wf.shape), full(bf.shape),
            full(w2.shape), full(b2.shape),
        ],
        out_specs=full((frames.shape[0], E)),
    )(frames, wf, bf, w2, b2)


# ----------------------------- params + one-time constant fold --------------
def init_params(key):
    ks = jax.random.split(key, 6)
    scale = 0.02
    return {
        "wp": scale * jax.random.normal(ks[0], (FL, D), jnp.float32),
        "bp": scale * jax.random.normal(ks[1], (1, D), jnp.float32),
        "w1": scale * jax.random.normal(ks[2], (D, H), jnp.float32),
        "b1": scale * jax.random.normal(ks[3], (1, H), jnp.float32),
        "w2": scale * jax.random.normal(ks[4], (H, E), jnp.float32),
        "b2": scale * jax.random.normal(ks[5], (1, E), jnp.float32),
    }


def fold_projection(params):
    # One-time host-side fold of the two pre-ReLU linear layers:
    #   (mean(f) @ wp + bp) @ w1 + b1 == mean(f) @ (wp @ w1) + (bp @ w1 + b1)
    w_fused = params["wp"] @ params["w1"]                      # (FL, H)
    b_fused = params["bp"] @ params["w1"] + params["b1"]       # (1, H)
    return {"w_fused": w_fused, "b_fused": b_fused,
            "w2": params["w2"], "b2": params["b2"]}


# ----------------------------- wrapper (glue in plain JAX) ------------------
@functools.partial(jax.jit, static_argnames=())
def clap_wrapper_forward(x, fused):
    # mirrors ClapWrapper.forward
    quantize = x.ndim == 3 and x.shape[1] == 1
    if quantize:
        x = x[:, 0, :]                              # squeeze(1)
    # framing reshape on a contiguous HBM array (free metadata; kernel reads
    # lane-dense (B, NF, 128) tiles — no in-kernel relayout).
    frames = x.reshape(x.shape[0], NF, FL)
    return clap_embed(frames, fused, quantize=quantize)        # (B, E), unit-norm


if __name__ == "__main__":
    key = jax.random.PRNGKey(0)
    k_x, k_p = jax.random.split(key)
    # values outside [-1, 1] exercise the clamp path of the quantizer
    x = jax.random.uniform(k_x, (B, 1, T), jnp.float32, minval=-1.5, maxval=1.5)
    params = init_params(k_p)
    fused = fold_projection(params)

    emb = clap_wrapper_forward(x, fused)
    jax.block_until_ready(emb)

    assert emb.shape == (B, E) and emb.dtype == jnp.float32
    # embeddings are unit-norm
    norms = jnp.linalg.norm(emb, axis=-1)
    assert bool(jnp.all(jnp.abs(norms - 1.0) < 1e-4))
    print("KERNEL_OK")
</pallas_src>

<mosaic_0001>
module attributes {stable_mosaic.version = 11 : i64} {
  func.func @_clap_fused_kernel(%arg0: memref<2x8x128xf32, #tpu.memory_space<vmem>>, %arg1: memref<128x128xf32, #tpu.memory_space<vmem>>, %arg2: memref<1x128xf32, #tpu.memory_space<vmem>>, %arg3: memref<128x128xf32, #tpu.memory_space<vmem>>, %arg4: memref<1x128xf32, #tpu.memory_space<vmem>>, %arg5: memref<2x128xf32, #tpu.memory_space<vmem>>) attributes {dimension_semantics = [], scalar_prefetch = 0 : i64, scratch_operands = 0 : i64, tpu.core_type = #tpu.core_type<tc>} {
    %c0 = arith.constant 0 : index
    %c0_0 = arith.constant 0 : index
    %c0_1 = arith.constant 0 : index
    %0 = vector.load %arg0[%c0, %c0_0, %c0_1] : memref<2x8x128xf32, #tpu.memory_space<vmem>>, vector<2x8x128xf32>
    %cst = arith.constant -1.000000e+00 : f32
    %cst_2 = arith.constant 1.000000e+00 : f32
    %1 = vector.broadcast %cst : f32 to vector<2x8x128xf32>
    %2 = arith.maximumf %1, %0 : vector<2x8x128xf32>
    %3 = vector.broadcast %cst_2 : f32 to vector<2x8x128xf32>
    %4 = arith.minimumf %3, %2 : vector<2x8x128xf32>
    %cst_3 = arith.constant 3.276700e+04 : f32
    %5 = vector.broadcast %cst_3 : f32 to vector<2x8x128xf32>
    %6 = arith.mulf %4, %5 : vector<2x8x128xf32>
    %7 = arith.fptosi %6 : vector<2x8x128xf32> to vector<2x8x128xi32>
    %8 = arith.sitofp %7 : vector<2x8x128xi32> to vector<2x8x128xf32>
    %cst_4 = arith.constant 3.276700e+04 : f32
    %9 = vector.broadcast %cst_4 : f32 to vector<2x8x128xf32>
    %10 = arith.divf %8, %9 : vector<2x8x128xf32>
    %cst_5 = arith.constant dense<0.000000e+00> : vector<2x128xf32>
    %11 = vector.multi_reduction <add>, %10, %cst_5 [1] : vector<2x8x128xf32> to vector<2x128xf32>
    %cst_6 = arith.constant 8.000000e+00 : f32
    %12 = vector.broadcast %cst_6 : f32 to vector<2x128xf32>
    %13 = arith.divf %11, %12 : vector<2x128xf32>
    %c0_7 = arith.constant 0 : index
    %c0_8 = arith.constant 0 : index
    %14 = vector.load %arg1[%c0_7, %c0_8] : memref<128x128xf32, #tpu.memory_space<vmem>>, vector<128x128xf32>
    %cst_9 = arith.constant dense<0.000000e+00> : vector<2x128xf32>
    %15 = tpu.matmul %13, %14, %cst_9 {dimension_numbers = #tpu.dot_dimension_numbers<[1], [0], [0], [1], [0, 0, 1, 1], [], []>} : vector<2x128xf32>, vector<128x128xf32>, vector<2x128xf32> -> vector<2x128xf32>
    %c0_10 = arith.constant 0 : index
    %c0_11 = arith.constant 0 : index
    %16 = vector.load %arg2[%c0_10, %c0_11] : memref<1x128xf32, #tpu.memory_space<vmem>>, vector<1x128xf32>
    %17 = vector.broadcast %16 : vector<1x128xf32> to vector<2x128xf32>
    %18 = arith.addf %15, %17 : vector<2x128xf32>
    %cst_12 = arith.constant 0.000000e+00 : f32
    %19 = vector.broadcast %cst_12 : f32 to vector<2x128xf32>
    %20 = arith.maximumf %18, %19 : vector<2x128xf32>
    %c0_13 = arith.constant 0 : index
    %c0_14 = arith.constant 0 : index
    %21 = vector.load %arg3[%c0_13, %c0_14] : memref<128x128xf32, #tpu.memory_space<vmem>>, vector<128x128xf32>
    %cst_15 = arith.constant dense<0.000000e+00> : vector<2x128xf32>
    %22 = tpu.matmul %20, %21, %cst_15 {dimension_numbers = #tpu.dot_dimension_numbers<[1], [0], [0], [1], [0, 0, 1, 1], [], []>} : vector<2x128xf32>, vector<128x128xf32>, vector<2x128xf32> -> vector<2x128xf32>
    %c0_16 = arith.constant 0 : index
    %c0_17 = arith.constant 0 : index
    %23 = vector.load %arg4[%c0_16, %c0_17] : memref<1x128xf32, #tpu.memory_space<vmem>>, vector<1x128xf32>
    %24 = vector.broadcast %23 : vector<1x128xf32> to vector<2x128xf32>
    %25 = arith.addf %22, %24 : vector<2x128xf32>
    %26 = arith.mulf %25, %25 : vector<2x128xf32>
    %cst_18 = arith.constant dense<0.000000e+00> : vector<2xf32>
    %27 = vector.multi_reduction <add>, %26, %cst_18 [1] : vector<2x128xf32> to vector<2xf32>
    %28 = vector.shape_cast %27 : vector<2xf32> to vector<2x1xf32>
    %29 = math.sqrt %28 : vector<2x1xf32>
    %cst_19 = arith.constant 9.99999996E-13 : f32
    %30 = vector.broadcast %cst_19 : f32 to vector<2x1xf32>
    %31 = arith.maximumf %29, %30 : vector<2x1xf32>
    %32 = vector.broadcast %31 : vector<2x1xf32> to vector<2x128xf32>
    %33 = arith.divf %25, %32 : vector<2x128xf32>
    %c0_20 = arith.constant 0 : index
    %c0_21 = arith.constant 0 : index
    %34 = vector.load %arg5[%c0_20, %c0_21] : memref<2x128xf32, #tpu.memory_space<vmem>>, vector<2x128xf32>
    tpu.vector_store %arg5[%c0_20, %c0_21], %33 {strides = array<i32>} : memref<2x128xf32, #tpu.memory_space<vmem>>, vector<2x128xf32>,
    return
  }
}

</mosaic_0001>

<bundles_post_ra>
// kernel: clap_wrapper_forward.1
= control target key start
LH: loop header
LB: loop body
LE: loop exit
PB: predicated region body
PF: predicated region fallthrough
CT: control target
= control target key end

     0   :  { %10 = vsyncpa [#allocation3], 0  ;;  %s616_s0 = inlined_call_operand.hbm [shape: f32[2,8,128], index: 0, kind: input, shape index: {}]   ;;  %s617_s1 = inlined_call_operand.hbm [shape: f32[128,128], index: 1, kind: input, shape index: {}]   ;;  %s618_s2 = inlined_call_operand.vmem [shape: f32[1,128], index: 2, kind: input, shape index: {}]   ;;  %s619_s3 = inlined_call_operand.hbm [shape: f32[128,128], index: 3, kind: input, shape index: {}]   ;;  %s620_s4 = inlined_call_operand.vmem [shape: f32[1,128], index: 4, kind: input, shape index: {}]   ;;  %s621_s5 = inlined_call_operand.hbm [shape: f32[2,128], index: 5, kind: output, shape index: {}]  }
   0x1   :  { %11 = vsyncpa [#allocation6], 0 }
   0x2   :  { %12 = vsyncpa [#allocation4], 0  ;;  %s526_s18 = smov [#allocation5]   ;;  %s527_s20 = smov [#allocation2]  }
   0x3   :  { %s30_s19 = sshll.u32 %s526_s18, 4  ;;  %s18_s21 = sshll.u32 %s527_s20, 4  ;;  %s31_s19 = int_to_ptr.vmem [resolvable:$true] %s30_s19  ;;  %s19_s21 = int_to_ptr.vmem [resolvable:$true] %s18_s21 }
   0x4   :  { %s448_s22 = scalar_lea.vmem %s31_s19, 2048  ;;  %p453_p1 = scmp.lt.s32.totalorder %s31_s19, %s31_s19 }
   0x5   :  { %p449_p0 = scmp.ne.s32.totalorder %s31_s19, %s448_s22  ;;  %p454_p2 = scmp.lt.s32.totalorder %s448_s22, %s448_s22 }
   0x7   :  { %p455_p3 = por %p454_p2, %p453_p1 }
   0x9   :  { %p456_p4 = pnand %p455_p3, %p449_p0 }
   0xb   :  { %459 = shalt.err (!%p456_p4)
}
   0xc   :  { %s528_s23 = smov 128   ;;  %s529_s24 = smov 8  }
   0xd   :  { %36 = dma.hbm_to_vmem [thread:$0]  %s617_s1, 2048, %s31_s19, [#allocation6], %s528_s23, %s528_s23, %s529_s24  }
   0xe   :  { %s468_s27 = scalar_lea.vmem %s19_s21, 256  ;;  %p473_p6 = scmp.lt.s32.totalorder %s19_s21, %s19_s21 }
   0xf   :  { %p469_p5 = scmp.ne.s32.totalorder %s19_s21, %s468_s27  ;;  %p474_p7 = scmp.lt.s32.totalorder %s468_s27, %s468_s27 }
  0x11   :  { %p475_p8 = por %p474_p7, %p473_p6 }
  0x13   :  { %p476_p9 = pnand %p475_p8, %p469_p5 }
  0x15   :  { %479 = shalt.err (!%p476_p9)
}
  0x16   :  { %24 = dma.hbm_to_vmem [thread:$0]  %s616_s0, 256, %s19_s21, [#allocation3], %s528_s23, %s528_s23, %s529_s24  }
  0x17   :  { %s530_s30 = smov [#allocation7]  }
  0x18   :  { %s44_s6 = sshll.u32 %s530_s30, 4  ;;  %s45_s6 = int_to_ptr.vmem [resolvable:$true] %s44_s6 }
  0x19   :  { %s488_s7 = scalar_lea.vmem %s45_s6, 2048  ;;  %p493_p11 = scmp.lt.s32.totalorder %s45_s6, %s45_s6 }
  0x1a   :  { %p489_p10 = scmp.ne.s32.totalorder %s45_s6, %s488_s7  ;;  %p494_p12 = scmp.lt.s32.totalorder %s488_s7, %s488_s7 }
  0x1c   :  { %p495_p13 = por %p494_p12, %p493_p11 }
  0x1e   :  { %p496_p0 = pnand %p495_p13, %p489_p10 }
  0x20   :  { %499 = shalt.err (!%p496_p0)
}
  0x21   :  { %50 = dma.hbm_to_vmem [thread:$0]  %s619_s3, 2048, %s45_s6, [#allocation6], %s528_s23, %s528_s23, %s529_s24  }
  0x22   :  { %520 = dma.done.wait [#allocation3], 256  }
  0x23   :  { %521 = vsyncadd [#allocation3], 4294967040 }
  0x24   :  { %522 = dma.done.wait [#allocation6], 4096  }
  0x25   :  { %523 = vsyncadd [#allocation6], 4294963200  ;;  %v531_v0 = vmov 0.0   ;;  %vm532_vm0 = vmmov 0   ;;  %v107_v1 = vld [vmem:[#allocation5 + $0x78] sm:$0xff]  ;;  %v106_v2 = vld [vmem:[#allocation5 + $0x70] sm:$0xff] }
  0x26   :  { %354 = vmatprep.subr.mxu0 %v531_v0  ;;  %386 = vmatprep.mubr.msk.f32.mxu0 %vm532_vm0, %v531_v0  ;;  %v105_v3 = vld [vmem:[#allocation5 + $0x68] sm:$0xff]  ;;  %v104_v4 = vld [vmem:[#allocation5 + $0x60] sm:$0xff]  ;;  %v62_v5 = vld [vmem:[#allocation2] sm:$0xff]  ;;  %vm117_vm1 = vcmask 1041409   ;;  %vm285_vm2 = vcmask 1041408  }
  0x27   :  { %389 = vmatprep.subr.mxu1 %v531_v0  ;;  %421 = vmatprep.mubr.msk.f32.mxu1 %vm532_vm0, %v531_v0  ;;  %v63_v6 = vld [vmem:[#allocation2 + $0x8] sm:$0xff]  ;;  %v316_v8 = vclamps-f32 %v62_v5, 1.0  ;;  %v205_v11 = vld [vmem:[#allocation7 + $0x70] sm:$0xff]  ;;  %v204_v15 = vld [vmem:[#allocation7 + $0x68] sm:$0xff] }
  0x28   :  { %355 = vmatpush3.msra.mxu0 %v107_v1  ;;  %v103_v7 = vld [vmem:[#allocation5 + $0x58] sm:$0xff]  ;;  %v317_v9 = vclamps-f32 %v63_v6, 1.0  ;;  %v102_v12 = vld [vmem:[#allocation5 + $0x50] sm:$0xff]  ;;  %v101_v16 = vld [vmem:[#allocation5 + $0x48] sm:$0xff] }
  0x29   :  { %356 = vmatprep.subr.mxu0 %v531_v0  ;;  %v206_v10 = vld [vmem:[#allocation7 + $0x78] sm:$0xff]  ;;  %v68_v13 = vmul.f32 32767.0, %v316_v8  ;;  %v203_v19 = vld [vmem:[#allocation7 + $0x60] sm:$0xff]  ;;  %v201_v27 = vld [vmem:[#allocation7 + $0x50] sm:$0xff] }
  0x2a   :  { %357 = vmatpush3.msra.mxu0 %v106_v2  ;;  %390 = vmatpush3.msra.mxu1 %v206_v10  ;;  %v69_v14 = vmul.f32 32767.0, %v317_v9  ;;  %v100_v20 = vld [vmem:[#allocation5 + $0x40] sm:$0xff]  ;;  %v202_v23 = vld [vmem:[#allocation7 + $0x58] sm:$0xff]  ;;  %v98_v28 = vld [vmem:[#allocation5 + $0x30] sm:$0xff] }
  0x2b   :  { %358 = vmatprep.subr.mxu0 %v531_v0  ;;  %391 = vmatprep.subr.mxu1 %v531_v0  ;;  %v424_v17 = vtrunc.f32 %v68_v13  ;;  %v99_v24 = vld [vmem:[#allocation5 + $0x38] sm:$0xff]  ;;  %v200_v31 = vld [vmem:[#allocation7 + $0x48] sm:$0xff]  ;;  %v199_v35 = vld [vmem:[#allocation7 + $0x40] sm:$0xff] }
  0x2c   :  { %359 = vmatpush3.msra.mxu0 %v105_v3  ;;  %392 = vmatpush3.msra.mxu1 %v205_v11  ;;  %v426_v18 = vtrunc.f32 %v69_v14  ;;  %v97_v32 = vld [vmem:[#allocation5 + $0x28] sm:$0xff]  ;;  %v96_v36 = vld [vmem:[#allocation5 + $0x20] sm:$0xff]  ;;  %v198_v39 = vld [vmem:[#allocation7 + $0x38] sm:$0xff] }
  0x2d   :  { %360 = vmatprep.subr.mxu0 %v531_v0  ;;  %393 = vmatprep.subr.mxu1 %v531_v0  ;;  %v425_v21 = vcvt.f32.s32 %v424_v17  ;;  %v95_v40 = vld [vmem:[#allocation5 + $0x18] sm:$0xff]  ;;  %v197_v43 = vld [vmem:[#allocation7 + $0x30] sm:$0xff]  ;;  %v196_v47 = vld [vmem:[#allocation7 + $0x28] sm:$0xff] }
  0x2e   :  { %361 = vmatpush3.msra.mxu0 %v104_v4  ;;  %394 = vmatpush3.msra.mxu1 %v204_v15  ;;  %v427_v22 = vcvt.f32.s32 %v426_v18  ;;  %v94_v44 = vld [vmem:[#allocation5 + $0x10] sm:$0xff]  ;;  %v93_v48 = vld [vmem:[#allocation5 + $0x8] sm:$0xff]  ;;  %v195_v51 = vld [vmem:[#allocation7 + $0x20] sm:$0xff] }
  0x2f   :  { %362 = vmatprep.subr.mxu0 %v531_v0  ;;  %395 = vmatprep.subr.mxu1 %v531_v0  ;;  %v72_v25 = vcvt.s32.f32 %v425_v21  ;;  %v92_v52 = vld [vmem:[#allocation5] sm:$0xff]  ;;  %v194_v55 = vld [vmem:[#allocation7 + $0x18] sm:$0xff]  ;;  %v193_v59 = vld [vmem:[#allocation7 + $0x10] sm:$0xff] }
  0x30   :  { %363 = vmatpush3.msra.mxu0 %v103_v7  ;;  %396 = vmatpush3.msra.mxu1 %v203_v19  ;;  %v73_v26 = vcvt.s32.f32 %v427_v22  ;;  %v192_v60 = vld [vmem:[#allocation7 + $0x8] sm:$0xff]  ;;  %v191_v61 = vld [vmem:[#allocation7] sm:$0xff]  ;;  %v318_v62 = vld [vmem:[%s618_s2] ss:$0 sm:$0xff]  ;;  %s533_s2 = smov [#allocation8]  }
  0x31   :  { %364 = vmatprep.subr.mxu0 %v531_v0  ;;  %397 = vmatprep.subr.mxu1 %v531_v0  ;;  %v75_v29 = vmul.f32 3.051851e-05, %v72_v25  ;;  %v319_v4 = vld [vmem:[%s620_s4] ss:$0 sm:$0xff]  ;;  %s306_s4 = sshll.u32 %s533_s2, 4  ;;  %s307_s4 = int_to_ptr.vmem [resolvable:$true] %s306_s4 }
  0x32   :  { %365 = vmatpush3.msra.mxu0 %v102_v12  ;;  %398 = vmatpush3.msra.mxu1 %v202_v23  ;;  %v76_v30 = vmul.f32 3.051851e-05, %v73_v26  ;;  %s500_s11 = scalar_lea.vmem %s307_s4, 32  ;;  %p505_p2 = scmp.lt.s32.totalorder %s307_s4, %s307_s4 }
  0x33   :  { %366 = vmatprep.subr.mxu0 %v531_v0  ;;  %399 = vmatprep.subr.mxu1 %v531_v0  ;;  %v77_v33 = vrot.slane %v75_v29, 4  ;;  %p501_p1 = scmp.ne.s32.totalorder %s307_s4, %s500_s11  ;;  %p506_p3 = scmp.lt.s32.totalorder %s500_s11, %s500_s11 }
  0x34   :  { %367 = vmatpush3.msra.mxu0 %v101_v16  ;;  %400 = vmatpush3.msra.mxu1 %v201_v27  ;;  %v83_v34 = vrot.slane %v76_v30, 4 }
  0x35   :  { %368 = vmatprep.subr.mxu0 %v531_v0  ;;  %401 = vmatprep.subr.mxu1 %v531_v0  ;;  %v78_v37 = vadd.f32 %v77_v33, %v75_v29  ;;  %p507_p4 = por %p506_p3, %p505_p2 }
  0x36   :  { %369 = vmatpush3.msra.mxu0 %v100_v20  ;;  %402 = vmatpush3.msra.mxu1 %v200_v31  ;;  %v84_v38 = vadd.f32 %v83_v34, %v76_v30 }
  0x37   :  { %370 = vmatprep.subr.mxu0 %v531_v0  ;;  %403 = vmatprep.subr.mxu1 %v531_v0  ;;  %v79_v41 = vrot.slane %v78_v37, 2  ;;  %p508_p5 = pnand %p507_p4, %p501_p1 }
  0x38   :  { %371 = vmatpush3.msra.mxu0 %v99_v24  ;;  %404 = vmatpush3.msra.mxu1 %v199_v35  ;;  %v85_v42 = vrot.slane %v84_v38, 2 }
  0x39   :  { %372 = vmatprep.subr.mxu0 %v531_v0  ;;  %405 = vmatprep.subr.mxu1 %v531_v0  ;;  %v80_v45 = vadd.f32 %v79_v41, %v78_v37 }
  0x3a   :  { %373 = vmatpush3.msra.mxu0 %v98_v28  ;;  %406 = vmatpush3.msra.mxu1 %v198_v39  ;;  %v86_v46 = vadd.f32 %v85_v42, %v84_v38 }
  0x3b   :  { %374 = vmatprep.subr.mxu0 %v531_v0  ;;  %407 = vmatprep.subr.mxu1 %v531_v0  ;;  %v81_v49 = vrot.slane %v80_v45, 1 }
  0x3c   :  { %375 = vmatpush3.msra.mxu0 %v97_v32  ;;  %408 = vmatpush3.msra.mxu1 %v197_v43  ;;  %v87_v50 = vrot.slane %v86_v46, 1 }
  0x3d   :  { %376 = vmatprep.subr.mxu0 %v531_v0  ;;  %409 = vmatprep.subr.mxu1 %v531_v0  ;;  %v82_v53 = vadd.f32 %v81_v49, %v80_v45 }
  0x3e   :  { %377 = vmatpush3.msra.mxu0 %v96_v36  ;;  %410 = vmatpush3.msra.mxu1 %v196_v47  ;;  %v88_v54 = vadd.f32 %v87_v50, %v86_v46 }
  0x3f   :  { %378 = vmatprep.subr.mxu0 %v531_v0  ;;  %411 = vmatprep.subr.mxu1 %v531_v0  ;;  %v90_v56 = vmul.f32 0.125, %v82_v53 }
  0x40   :  { %379 = vmatpush3.msra.mxu0 %v95_v40  ;;  %412 = vmatpush3.msra.mxu1 %v195_v51  ;;  %v91_v57 = vmul.f32 0.125, %v88_v54 }
  0x41   :  { %380 = vmatprep.subr.mxu0 %v531_v0  ;;  %413 = vmatprep.subr.mxu1 %v531_v0 }
  0x42   :  { %381 = vmatpush3.msra.mxu0 %v94_v44  ;;  %414 = vmatpush3.msra.mxu1 %v194_v55  ;;  %v118_v58 = vsel %vm117_vm1, %v91_v57, %v90_v56 }
  0x43   :  { %382 = vmatprep.subr.mxu0 %v531_v0  ;;  %415 = vmatprep.subr.mxu1 %v531_v0 }
  0x44   :  { %383 = vmatpush3.msra.mxu0 %v93_v48  ;;  %416 = vmatpush3.msra.mxu1 %v193_v59 }
  0x45   :  { %384 = vmatprep.subr.mxu0 %v531_v0  ;;  %417 = vmatprep.subr.mxu1 %v531_v0 }
  0x46   :  { %385 = vmatpush3.msra.mxu0 %v92_v52  ;;  %418 = vmatpush3.msra.mxu1 %v192_v60 }
  0x47   :  { %387 = vmatmul.mubr.f32.vlgmr.msra.gmra.mxu0 %v118_v58  ;;  %419 = vmatprep.subr.mxu1 %v531_v0 }
  0x48   :  { %420 = vmatpush3.msra.mxu1 %v191_v61 }
 0x107   :  { %v186_v63 = vpop.f32.mrf.mxu0 }
 0x108   :  { %v187_v1 = vadd.f32 %v318_v62, %v186_v63 }
 0x109   :  { %v388_v2 = vpop.f32.mrf.mxu0 }
 0x10a   :  { %v190_v3 = vmax.f32 %v187_v1, 0.0 }
 0x10c   :  { %422 = vmatmul.mubr.f32.vlgmr.msra.gmra.mxu1 %v190_v3 }
 0x1cc   :  { %v280_v5 = vpop.f32.mrf.mxu1 }
 0x1cd   :  { %v281_v6 = vadd.f32 %v319_v4, %v280_v5 }
 0x1ce   :  { %v423_v7 = vpop.f32.mrf.mxu1 }
 0x1cf   :  { %v284_v0 = vmul.f32 %v281_v6, %v281_v6 }
 0x1d1   :  { %v286_v8 = vsel %vm285_vm2, %v284_v0, 0.0 }
 0x1d2   :  { %287 = vadd.xlane.f32.xlu0 %v286_v8 }
 0x25b   :  { %v288_v9 = vpop.xlane.xlu0 %287 }
 0x25c   :  { %436 = vrsqrt.f32 %v288_v9  ;;  %vm291_vm3 = vcmp.eq.f32.partialorder %v288_v9, inf  ;;  %v294_v12 = vand.u32 2147483648, %v288_v9  ;;  %vm293_vm4 = vcmp.eq.f32.partialorder %v288_v9, 0.0 }
 0x269   :  { %v437_v10 = vpop.eup %436 }
 0x26a   :  { %v290_v11 = vmul.f32 %v437_v10, %v288_v9 }
 0x26c   :  { %v292_v13 = vsel %vm291_vm3, %v288_v9, %v290_v11 }
 0x26d   :  { %v295_v14 = vsel %vm293_vm4, %v294_v12, %v292_v13 }
 0x26e   :  { %v296_v15 = vmax.f32 %v295_v14, 1e-12 }
 0x270   :  { %438 = vrcp.f32 %v296_v15 }
 0x27d   :  { %v439_v16 = vpop.eup %438 }
 0x27e   :  { %v298_v17 = vmul.f32 %v439_v16, %v281_v6 }
 0x280   :  { %299 = vst [vmem:[#allocation8] sm:$0x3] %v298_v17 }
 0x281   :  { %511 = shalt.err (!%p508_p5)
}
 0x282   :  { %309 = dma.vmem_to_hbm [thread:$0]  %s307_s4, 32, %s621_s5, [#allocation4]  }
 0x283   :  { %524 = dma.done.wait [#allocation4], 32  }
 0x284   :  { %525 = vsyncadd [#allocation4], 4294967264 }
 0x285   :  { %313 = vsyncpa [#allocation3], 1 }
 0x286   :  { %314 = vsyncpa [#allocation6], 1 }
 0x287   :  { %315 = vsyncpa [#allocation4], 1 }

</bundles_post_ra>
